<compile_context>
chip_gen: v7x
topology: tpu7x:2x2x1
jax: 0.10.0
libtpu: 0.0.40
codegen_flags: <defaults>
</compile_context>

<pallas_src>
import jax
import jax.numpy as jnp
from jax.experimental import pallas as pl
from jax.experimental.pallas import tpu as pltpu


def _round_up(x, m):
    return ((x + m - 1) // m) * m


def _vmem_budget_bytes():
    """~Half of physical VMEM: ~32 MiB on v7x (64 MiB/TC), ~64 MiB on v5e/v6e (128 MiB)."""
    try:
        cap = pltpu.get_tpu_info().vmem_capacity_bytes
    except Exception:
        cap = 64 * 1024 * 1024          # conservative fallback, safe on every generation
    return int(min(cap // 2, 100 * 1024 * 1024))


def _pick_batch_tile(b, budget_bytes, weight_bytes, row_bytes):
    """Rows per grid step, derived from the VMEM budget (not just divisibility)."""
    if b <= 8:
        return b                                        # tiny batch: one resident block
    avail = max(budget_bytes - weight_bytes, 2 * 1024 * 1024)
    bt = max(8, min(avail // row_bytes, 512))           # >512 rows buys nothing extra
    if b >= 256:
        # >=2 grid steps so dimension_semantics=("parallel",) can use both v7x TensorCores,
        # while each step keeps >=128 rows so the MXU stays fed on single-TC parts (v5e/v6e).
        bt = min(bt, _round_up((b + 1) // 2, 8))
    return max(8, (bt // 8) * 8)


# ----------------------------------------------------------------------------
# Fused encoder head. One grid step == one batch tile; everything stays in VMEM/vregs.
#   x_ref  : [Bt, Cp]  f32 pooled image features      (Cp = in_channels padded to 128)
#   wb_ref : [Cp, Fp]  bf16 backbone weight           (Fp = backbone_features padded to 128)
#   bb_ref : [1,  Fp]  f32
#   w1_ref : [Fp, Np]  bf16    b1_ref : [1, Np] f32   (Np = n_feature padded to 128)
#   w2_ref : [Np, Np]  bf16    b2_ref : [1, Np] f32
#   out_ref: [Bt, Np]  f32
# ----------------------------------------------------------------------------
def _encoder_head_kernel(x_ref, wb_ref, bb_ref, w1_ref, b1_ref, w2_ref, b2_ref, out_ref):
    x_bf = x_ref[...].astype(jnp.bfloat16)                            # bf16 MXU operand
    feat = jnp.dot(x_bf, wb_ref[...],
                   preferred_element_type=jnp.float32) + bb_ref[...]  # backbone linear (f32 acc)
    xb = jnp.maximum(feat, 0.0)                                       # F.relu(x_backbone)
    h = jnp.dot(xb.astype(jnp.bfloat16), w1_ref[...],
                preferred_element_type=jnp.float32) + b1_ref[...]     # last_layer1
    h = jnp.maximum(h, 0.0)                                           # F.relu(...)
    out_ref[...] = jnp.dot(h.astype(jnp.bfloat16), w2_ref[...],
                           preferred_element_type=jnp.float32) + b2_ref[...]   # last_layer2


def init_params(key, in_channels, backbone_features, n_feature):
    """Logical (PyTorch-like) parameters, stored transposed as [in, out], all f32."""
    ks = jax.random.split(key, 5)

    def lin_w(k, fan_in, fan_out):
        scale = 1.0 / jnp.sqrt(jnp.float32(fan_in))
        return jax.random.uniform(k, (fan_in, fan_out), jnp.float32, -scale, scale)

    return {
        "wb": lin_w(ks[0], in_channels, backbone_features),
        "bb": jnp.zeros((1, backbone_features), jnp.float32),
        "w1": lin_w(ks[1], backbone_features, n_feature),
        "b1": jax.random.uniform(ks[2], (1, n_feature), jnp.float32, -0.01, 0.01),
        "w2": lin_w(ks[3], n_feature, n_feature),
        "b2": jax.random.uniform(ks[4], (1, n_feature), jnp.float32, -0.01, 0.01),
    }


def prepare_kernel_params(params):
    """One-time transform: zero-pad feature dims to lane-dense multiples of 128 and cast the
    matmul weights to bf16 (native MXU rate, half the HBM/VMEM bytes); biases stay f32."""
    c, fb = params["wb"].shape
    nf = params["w1"].shape[1]
    cp = _round_up(c, 128)
    fp = _round_up(fb, 128)
    npad = _round_up(nf, 128)

    def pad2(a, rows, cols):
        return jnp.pad(a, ((0, rows - a.shape[0]), (0, cols - a.shape[1])))

    return {
        "wb": pad2(params["wb"], cp, fp).astype(jnp.bfloat16),
        "bb": pad2(params["bb"], 1, fp),
        "w1": pad2(params["w1"], fp, npad).astype(jnp.bfloat16),
        "b1": pad2(params["b1"], 1, npad),
        "w2": pad2(params["w2"], npad, npad).astype(jnp.bfloat16),
        "b2": pad2(params["b2"], 1, npad),
    }


def autoencoder_forward(x_nchw, kparams, n_feature, single_buffer_weights=True):
    """Forward pass (== encoder). x_nchw: [B, C, H, W] f32."""
    B, C, H, W = x_nchw.shape
    Cp, Fp = kparams["wb"].shape
    Np = kparams["w2"].shape[1]

    # Stand-in backbone stage 1: global-avg-pool as a fused XLA reduce (not folded into the
    # GEMM, so no HW-replicated weight and the kernel fits v7x VMEM at real image sizes).
    pooled = jnp.mean(x_nchw.reshape(B, C, H * W), axis=-1)           # [B, C] f32

    budget = _vmem_budget_bytes()
    wbuf = 1 if single_buffer_weights else 2
    weight_bytes = wbuf * (2 * (Cp * Fp + Fp * Np + Np * Np)          # bf16 weights
                           + 4 * (Fp + 2 * Np))                       # f32 biases
    row_bytes = 2 * 4 * (Cp + Np)                                     # x + out blocks, dbl-buffered
    Bt = _pick_batch_tile(B, budget, weight_bytes, row_bytes)
    Bp = _round_up(B, Bt)
    nb = Bp // Bt

    x2d = jnp.pad(pooled, ((0, Bp - B), (0, Cp - C)))                 # lane/sublane zero padding

    full = lambda i: (0, 0)
    if single_buffer_weights:
        # Grid-invariant blocks: single VMEM copy instead of the default double buffer.
        wspec = lambda shape: pl.BlockSpec(shape, full, pipeline_mode=pl.Buffered(1))
    else:
        wspec = lambda shape: pl.BlockSpec(shape, full)

    cost = pl.CostEstimate(
        flops=2 * Bp * (Cp * Fp + Fp * Np + Np * Np),
        transcendentals=0,
        bytes_accessed=Bp * Cp * 4 + Bp * Np * 4
        + 2 * (Cp * Fp + Fp * Np + Np * Np) + 4 * (Fp + 2 * Np),
    )

    out_padded = pl.pallas_call(
        _encoder_head_kernel,
        out_shape=jax.ShapeDtypeStruct((Bp, Np), jnp.float32),
        grid=(nb,),
        in_specs=[
            pl.BlockSpec((Bt, Cp), lambda i: (i, 0)),                 # pooled x tile
            wspec((Cp, Fp)), wspec((1, Fp)),                          # backbone weight / bias
            wspec((Fp, Np)), wspec((1, Np)),                          # last_layer1
            wspec((Np, Np)), wspec((1, Np)),                          # last_layer2
        ],
        out_specs=pl.BlockSpec((Bt, Np), lambda i: (i, 0)),
        compiler_params=pltpu.CompilerParams(
            dimension_semantics=("parallel",),                        # shard batch over TCs (v7x)
            vmem_limit_bytes=budget,                                  # ~32 MiB v7x, ~64 MiB v5e/v6e
        ),
        cost_estimate=cost,
    )(x2d, kparams["wb"], kparams["bb"], kparams["w1"], kparams["b1"],
      kparams["w2"], kparams["b2"])

    # NOTE: downstream code that can consume the 128-padded layout should skip this slice.
    return out_padded[:B, :n_feature]


def _reference_forward(x_nchw, params):
    """Pure-JAX f32 reference of the same math, for a sanity check."""
    B, C, H, W = x_nchw.shape
    pooled = jnp.mean(x_nchw.reshape(B, C, H * W), axis=-1)
    feat = pooled @ params["wb"] + params["bb"]
    xb = jax.nn.relu(feat)
    h = jax.nn.relu(xb @ params["w1"] + params["b1"])
    return h @ params["w2"] + params["b2"]


if __name__ == "__main__":
    # Small shapes consistent with the module: 3-channel image in, MLP head out.
    B, C, H, W = 2, 3, 16, 16
    backbone_features = 64
    n_feature = 32

    key = jax.random.PRNGKey(0)
    k_x, k_p = jax.random.split(key)
    x = jax.random.normal(k_x, (B, C, H, W), jnp.float32)
    params = init_params(k_p, C, backbone_features, n_feature)
    kparams = prepare_kernel_params(params)

    fwd = jax.jit(autoencoder_forward,
                  static_argnames=("n_feature", "single_buffer_weights"))
    try:
        out = jax.block_until_ready(
            fwd(x, kparams, n_feature=n_feature, single_buffer_weights=True))
    except Exception:
        # This jax/Mosaic build rejects pl.Buffered(1); retry with default double buffering.
        out = jax.block_until_ready(
            fwd(x, kparams, n_feature=n_feature, single_buffer_weights=False))

    ref = _reference_forward(x, params)
    assert out.shape == (B, n_feature)
    # bf16 MXU operands (f32 accumulation) on all three GEMMs: sub-1e-3 abs error here.
    assert jnp.allclose(out, ref, atol=2e-3, rtol=2e-2), float(jnp.max(jnp.abs(out - ref)))

    print("KERNEL_OK")
</pallas_src>

<mosaic_0001>
module attributes {stable_mosaic.version = 11 : i64} {
  func.func @_encoder_head_kernel(%arg0: i32, %arg1: memref<2x128xf32, #tpu.memory_space<vmem>>, %arg2: memref<128x128xbf16, #tpu.memory_space<vmem>>, %arg3: memref<1x128xf32, #tpu.memory_space<vmem>>, %arg4: memref<128x128xbf16, #tpu.memory_space<vmem>>, %arg5: memref<1x128xf32, #tpu.memory_space<vmem>>, %arg6: memref<128x128xbf16, #tpu.memory_space<vmem>>, %arg7: memref<1x128xf32, #tpu.memory_space<vmem>>, %arg8: memref<2x128xf32, #tpu.memory_space<vmem>>) attributes {dimension_semantics = [#tpu.dimension_semantics<parallel>], iteration_bounds = array<i64: 1>, scalar_prefetch = 0 : i64, scratch_operands = 0 : i64, tpu.core_type = #tpu.core_type<tc>, window_params = [{transform_indices = @transform_0, window_bounds = array<i64: 2, 128>}, {pipeline_mode = #tpu.pipeline_mode<synchronous>, transform_indices = @transform_1, window_bounds = array<i64: 128, 128>}, {pipeline_mode = #tpu.pipeline_mode<synchronous>, transform_indices = @transform_2, window_bounds = array<i64: 1, 128>}, {pipeline_mode = #tpu.pipeline_mode<synchronous>, transform_indices = @transform_3, window_bounds = array<i64: 128, 128>}, {pipeline_mode = #tpu.pipeline_mode<synchronous>, transform_indices = @transform_4, window_bounds = array<i64: 1, 128>}, {pipeline_mode = #tpu.pipeline_mode<synchronous>, transform_indices = @transform_5, window_bounds = array<i64: 128, 128>}, {pipeline_mode = #tpu.pipeline_mode<synchronous>, transform_indices = @transform_6, window_bounds = array<i64: 1, 128>}, {transform_indices = @transform_7, window_bounds = array<i64: 2, 128>}]} {
    %c0 = arith.constant 0 : index
    %c0_0 = arith.constant 0 : index
    %0 = vector.load %arg1[%c0, %c0_0] : memref<2x128xf32, #tpu.memory_space<vmem>>, vector<2x128xf32>
    %1 = arith.truncf %0 : vector<2x128xf32> to vector<2x128xbf16>
    %c0_1 = arith.constant 0 : index
    %c0_2 = arith.constant 0 : index
    %2 = vector.load %arg2[%c0_1, %c0_2] : memref<128x128xbf16, #tpu.memory_space<vmem>>, vector<128x128xbf16>
    %cst = arith.constant dense<0.000000e+00> : vector<2x128xf32>
    %3 = tpu.matmul %1, %2, %cst {dimension_numbers = #tpu.dot_dimension_numbers<[1], [0], [0], [1], [0, 0, 1, 1], [], []>} : vector<2x128xbf16>, vector<128x128xbf16>, vector<2x128xf32> -> vector<2x128xf32>
    %c0_3 = arith.constant 0 : index
    %c0_4 = arith.constant 0 : index
    %4 = vector.load %arg3[%c0_3, %c0_4] : memref<1x128xf32, #tpu.memory_space<vmem>>, vector<1x128xf32>
    %5 = vector.broadcast %4 : vector<1x128xf32> to vector<2x128xf32>
    %6 = arith.addf %3, %5 : vector<2x128xf32>
    %cst_5 = arith.constant 0.000000e+00 : f32
    %7 = vector.broadcast %cst_5 : f32 to vector<2x128xf32>
    %8 = arith.maximumf %6, %7 : vector<2x128xf32>
    %9 = arith.truncf %8 : vector<2x128xf32> to vector<2x128xbf16>
    %c0_6 = arith.constant 0 : index
    %c0_7 = arith.constant 0 : index
    %10 = vector.load %arg4[%c0_6, %c0_7] : memref<128x128xbf16, #tpu.memory_space<vmem>>, vector<128x128xbf16>
    %cst_8 = arith.constant dense<0.000000e+00> : vector<2x128xf32>
    %11 = tpu.matmul %9, %10, %cst_8 {dimension_numbers = #tpu.dot_dimension_numbers<[1], [0], [0], [1], [0, 0, 1, 1], [], []>} : vector<2x128xbf16>, vector<128x128xbf16>, vector<2x128xf32> -> vector<2x128xf32>
    %c0_9 = arith.constant 0 : index
    %c0_10 = arith.constant 0 : index
    %12 = vector.load %arg5[%c0_9, %c0_10] : memref<1x128xf32, #tpu.memory_space<vmem>>, vector<1x128xf32>
    %13 = vector.broadcast %12 : vector<1x128xf32> to vector<2x128xf32>
    %14 = arith.addf %11, %13 : vector<2x128xf32>
    %cst_11 = arith.constant 0.000000e+00 : f32
    %15 = vector.broadcast %cst_11 : f32 to vector<2x128xf32>
    %16 = arith.maximumf %14, %15 : vector<2x128xf32>
    %17 = arith.truncf %16 : vector<2x128xf32> to vector<2x128xbf16>
    %c0_12 = arith.constant 0 : index
    %c0_13 = arith.constant 0 : index
    %18 = vector.load %arg6[%c0_12, %c0_13] : memref<128x128xbf16, #tpu.memory_space<vmem>>, vector<128x128xbf16>
    %cst_14 = arith.constant dense<0.000000e+00> : vector<2x128xf32>
    %19 = tpu.matmul %17, %18, %cst_14 {dimension_numbers = #tpu.dot_dimension_numbers<[1], [0], [0], [1], [0, 0, 1, 1], [], []>} : vector<2x128xbf16>, vector<128x128xbf16>, vector<2x128xf32> -> vector<2x128xf32>
    %c0_15 = arith.constant 0 : index
    %c0_16 = arith.constant 0 : index
    %20 = vector.load %arg7[%c0_15, %c0_16] : memref<1x128xf32, #tpu.memory_space<vmem>>, vector<1x128xf32>
    %21 = vector.broadcast %20 : vector<1x128xf32> to vector<2x128xf32>
    %22 = arith.addf %19, %21 : vector<2x128xf32>
    %c0_17 = arith.constant 0 : index
    %c0_18 = arith.constant 0 : index
    %23 = vector.load %arg8[%c0_17, %c0_18] : memref<2x128xf32, #tpu.memory_space<vmem>>, vector<2x128xf32>
    tpu.vector_store %arg8[%c0_17, %c0_18], %22 {strides = array<i32>} : memref<2x128xf32, #tpu.memory_space<vmem>>, vector<2x128xf32>,
    return
  }
  func.func @transform_0(%arg0: i32) -> (i32, i32) {
    %c0_i32 = arith.constant 0 : i32
    %c0_i32_0 = arith.constant 0 : i32
    return %arg0, %c0_i32 : i32, i32
  }
  func.func @transform_1(%arg0: i32) -> (i32, i32) {
    %c0_i32 = arith.constant 0 : i32
    %c0_i32_0 = arith.constant 0 : i32
    %c0_i32_1 = arith.constant 0 : i32
    return %c0_i32, %c0_i32_0 : i32, i32
  }
  func.func @transform_2(%arg0: i32) -> (i32, i32) {
    %c0_i32 = arith.constant 0 : i32
    %c0_i32_0 = arith.constant 0 : i32
    %c0_i32_1 = arith.constant 0 : i32
    return %c0_i32, %c0_i32_0 : i32, i32
  }
  func.func @transform_3(%arg0: i32) -> (i32, i32) {
    %c0_i32 = arith.constant 0 : i32
    %c0_i32_0 = arith.constant 0 : i32
    %c0_i32_1 = arith.constant 0 : i32
    return %c0_i32, %c0_i32_0 : i32, i32
  }
  func.func @transform_4(%arg0: i32) -> (i32, i32) {
    %c0_i32 = arith.constant 0 : i32
    %c0_i32_0 = arith.constant 0 : i32
    %c0_i32_1 = arith.constant 0 : i32
    return %c0_i32, %c0_i32_0 : i32, i32
  }
  func.func @transform_5(%arg0: i32) -> (i32, i32) {
    %c0_i32 = arith.constant 0 : i32
    %c0_i32_0 = arith.constant 0 : i32
    %c0_i32_1 = arith.constant 0 : i32
    return %c0_i32, %c0_i32_0 : i32, i32
  }
  func.func @transform_6(%arg0: i32) -> (i32, i32) {
    %c0_i32 = arith.constant 0 : i32
    %c0_i32_0 = arith.constant 0 : i32
    %c0_i32_1 = arith.constant 0 : i32
    return %c0_i32, %c0_i32_0 : i32, i32
  }
  func.func @transform_7(%arg0: i32) -> (i32, i32) {
    %c0_i32 = arith.constant 0 : i32
    %c0_i32_0 = arith.constant 0 : i32
    return %arg0, %c0_i32 : i32, i32
  }
}

module attributes {stable_mosaic.version = 11 : i64} {
  func.func @_encoder_head_kernel(%arg0: i32, %arg1: memref<2x128xf32, #tpu.memory_space<vmem>>, %arg2: memref<128x128xbf16, #tpu.memory_space<vmem>>, %arg3: memref<1x128xf32, #tpu.memory_space<vmem>>, %arg4: memref<128x128xbf16, #tpu.memory_space<vmem>>, %arg5: memref<1x128xf32, #tpu.memory_space<vmem>>, %arg6: memref<128x128xbf16, #tpu.memory_space<vmem>>, %arg7: memref<1x128xf32, #tpu.memory_space<vmem>>, %arg8: memref<2x128xf32, #tpu.memory_space<vmem>>) attributes {dimension_semantics = [#tpu.dimension_semantics<parallel>], iteration_bounds = array<i64: 1>, scalar_prefetch = 0 : i64, scratch_operands = 0 : i64, tpu.core_type = #tpu.core_type<tc>, window_params = [{transform_indices = @transform_0, window_bounds = array<i64: 2, 128>}, {pipeline_mode = #tpu.pipeline_mode<synchronous>, transform_indices = @transform_1, window_bounds = array<i64: 128, 128>}, {pipeline_mode = #tpu.pipeline_mode<synchronous>, transform_indices = @transform_2, window_bounds = array<i64: 1, 128>}, {pipeline_mode = #tpu.pipeline_mode<synchronous>, transform_indices = @transform_3, window_bounds = array<i64: 128, 128>}, {pipeline_mode = #tpu.pipeline_mode<synchronous>, transform_indices = @transform_4, window_bounds = array<i64: 1, 128>}, {pipeline_mode = #tpu.pipeline_mode<synchronous>, transform_indices = @transform_5, window_bounds = array<i64: 128, 128>}, {pipeline_mode = #tpu.pipeline_mode<synchronous>, transform_indices = @transform_6, window_bounds = array<i64: 1, 128>}, {transform_indices = @transform_7, window_bounds = array<i64: 2, 128>}]} {
    %c0 = arith.constant 0 : index
    %c0_0 = arith.constant 0 : index
    %0 = vector.load %arg1[%c0, %c0_0] : memref<2x128xf32, #tpu.memory_space<vmem>>, vector<2x128xf32>
    %1 = arith.truncf %0 : vector<2x128xf32> to vector<2x128xbf16>
    %c0_1 = arith.constant 0 : index
    %c0_2 = arith.constant 0 : index
    %2 = vector.load %arg2[%c0_1, %c0_2] : memref<128x128xbf16, #tpu.memory_space<vmem>>, vector<128x128xbf16>
    %cst = arith.constant dense<0.000000e+00> : vector<2x128xf32>
    %3 = tpu.matmul %1, %2, %cst {dimension_numbers = #tpu.dot_dimension_numbers<[1], [0], [0], [1], [0, 0, 1, 1], [], []>} : vector<2x128xbf16>, vector<128x128xbf16>, vector<2x128xf32> -> vector<2x128xf32>
    %c0_3 = arith.constant 0 : index
    %c0_4 = arith.constant 0 : index
    %4 = vector.load %arg3[%c0_3, %c0_4] : memref<1x128xf32, #tpu.memory_space<vmem>>, vector<1x128xf32>
    %5 = vector.broadcast %4 : vector<1x128xf32> to vector<2x128xf32>
    %6 = arith.addf %3, %5 : vector<2x128xf32>
    %cst_5 = arith.constant 0.000000e+00 : f32
    %7 = vector.broadcast %cst_5 : f32 to vector<2x128xf32>
    %8 = arith.maximumf %6, %7 : vector<2x128xf32>
    %9 = arith.truncf %8 : vector<2x128xf32> to vector<2x128xbf16>
    %c0_6 = arith.constant 0 : index
    %c0_7 = arith.constant 0 : index
    %10 = vector.load %arg4[%c0_6, %c0_7] : memref<128x128xbf16, #tpu.memory_space<vmem>>, vector<128x128xbf16>
    %cst_8 = arith.constant dense<0.000000e+00> : vector<2x128xf32>
    %11 = tpu.matmul %9, %10, %cst_8 {dimension_numbers = #tpu.dot_dimension_numbers<[1], [0], [0], [1], [0, 0, 1, 1], [], []>} : vector<2x128xbf16>, vector<128x128xbf16>, vector<2x128xf32> -> vector<2x128xf32>
    %c0_9 = arith.constant 0 : index
    %c0_10 = arith.constant 0 : index
    %12 = vector.load %arg5[%c0_9, %c0_10] : memref<1x128xf32, #tpu.memory_space<vmem>>, vector<1x128xf32>
    %13 = vector.broadcast %12 : vector<1x128xf32> to vector<2x128xf32>
    %14 = arith.addf %11, %13 : vector<2x128xf32>
    %cst_11 = arith.constant 0.000000e+00 : f32
    %15 = vector.broadcast %cst_11 : f32 to vector<2x128xf32>
    %16 = arith.maximumf %14, %15 : vector<2x128xf32>
    %17 = arith.truncf %16 : vector<2x128xf32> to vector<2x128xbf16>
    %c0_12 = arith.constant 0 : index
    %c0_13 = arith.constant 0 : index
    %18 = vector.load %arg6[%c0_12, %c0_13] : memref<128x128xbf16, #tpu.memory_space<vmem>>, vector<128x128xbf16>
    %cst_14 = arith.constant dense<0.000000e+00> : vector<2x128xf32>
    %19 = tpu.matmul %17, %18, %cst_14 {dimension_numbers = #tpu.dot_dimension_numbers<[1], [0], [0], [1], [0, 0, 1, 1], [], []>} : vector<2x128xbf16>, vector<128x128xbf16>, vector<2x128xf32> -> vector<2x128xf32>
    %c0_15 = arith.constant 0 : index
    %c0_16 = arith.constant 0 : index
    %20 = vector.load %arg7[%c0_15, %c0_16] : memref<1x128xf32, #tpu.memory_space<vmem>>, vector<1x128xf32>
    %21 = vector.broadcast %20 : vector<1x128xf32> to vector<2x128xf32>
    %22 = arith.addf %19, %21 : vector<2x128xf32>
    %c0_17 = arith.constant 0 : index
    %c0_18 = arith.constant 0 : index
    %23 = vector.load %arg8[%c0_17, %c0_18] : memref<2x128xf32, #tpu.memory_space<vmem>>, vector<2x128xf32>
    tpu.vector_store %arg8[%c0_17, %c0_18], %22 {strides = array<i32>} : memref<2x128xf32, #tpu.memory_space<vmem>>, vector<2x128xf32>,
    return
  }
  func.func @transform_0(%arg0: i32) -> (i32, i32) {
    %c0_i32 = arith.constant 0 : i32
    %c0_i32_0 = arith.constant 0 : i32
    return %arg0, %c0_i32 : i32, i32
  }
  func.func @transform_1(%arg0: i32) -> (i32, i32) {
    %c0_i32 = arith.constant 0 : i32
    %c0_i32_0 = arith.constant 0 : i32
    %c0_i32_1 = arith.constant 0 : i32
    return %c0_i32, %c0_i32_0 : i32, i32
  }
  func.func @transform_2(%arg0: i32) -> (i32, i32) {
    %c0_i32 = arith.constant 0 : i32
    %c0_i32_0 = arith.constant 0 : i32
    %c0_i32_1 = arith.constant 0 : i32
    return %c0_i32, %c0_i32_0 : i32, i32
  }
  func.func @transform_3(%arg0: i32) -> (i32, i32) {
    %c0_i32 = arith.constant 0 : i32
    %c0_i32_0 = arith.constant 0 : i32
    %c0_i32_1 = arith.constant 0 : i32
    return %c0_i32, %c0_i32_0 : i32, i32
  }
  func.func @transform_4(%arg0: i32) -> (i32, i32) {
    %c0_i32 = arith.constant 0 : i32
    %c0_i32_0 = arith.constant 0 : i32
    %c0_i32_1 = arith.constant 0 : i32
    return %c0_i32, %c0_i32_0 : i32, i32
  }
  func.func @transform_5(%arg0: i32) -> (i32, i32) {
    %c0_i32 = arith.constant 0 : i32
    %c0_i32_0 = arith.constant 0 : i32
    %c0_i32_1 = arith.constant 0 : i32
    return %c0_i32, %c0_i32_0 : i32, i32
  }
  func.func @transform_6(%arg0: i32) -> (i32, i32) {
    %c0_i32 = arith.constant 0 : i32
    %c0_i32_0 = arith.constant 0 : i32
    %c0_i32_1 = arith.constant 0 : i32
    return %c0_i32, %c0_i32_0 : i32, i32
  }
  func.func @transform_7(%arg0: i32) -> (i32, i32) {
    %c0_i32 = arith.constant 0 : i32
    %c0_i32_0 = arith.constant 0 : i32
    return %arg0, %c0_i32 : i32, i32
  }
}

</mosaic_0001>

<bundles_post_ra>
// kernel: autoencoder_forward.1
= control target key start
LH: loop header
LB: loop body
LE: loop exit
PB: predicated region body
PF: predicated region fallthrough
CT: control target
= control target key end

     0   :  { %12 = vsyncpa [#allocation3], 0  ;;  %s778_s0 = inlined_call_operand.vmem [shape: f32[2,128], index: 0, kind: input, shape index: {}]   ;;  %s779_s1 = inlined_call_operand.vmem [shape: bf16[128,128], index: 1, kind: input, shape index: {}]   ;;  %s780_s2 = inlined_call_operand.vmem [shape: f32[1,128], index: 2, kind: input, shape index: {}]   ;;  %s781_s3 = inlined_call_operand.hbm [shape: bf16[128,128], index: 3, kind: input, shape index: {}]   ;;  %s782_s4 = inlined_call_operand.vmem [shape: f32[1,128], index: 4, kind: input, shape index: {}]   ;;  %s783_s5 = inlined_call_operand.hbm [shape: bf16[128,128], index: 5, kind: input, shape index: {}]   ;;  %s784_s6 = inlined_call_operand.vmem [shape: f32[1,128], index: 6, kind: input, shape index: {}]   ;;  %s785_s7 = inlined_call_operand.hbm [shape: f32[2,128], index: 7, kind: output, shape index: {}]  }
   0x1   :  { %13 = vsyncpa [#allocation6], 0 }
   0x2   :  { %14 = vsyncpa [#allocation4], 0  ;;  %s629_s24 = smov [#allocation2]   ;;  %s557_s28 = scalar_lea.hbm %s781_s3, 1024 }
   0x3   :  { %s26_s25 = sshll.u32 %s629_s24, 4  ;;  %p558_p0 = scmp.ne.s32.totalorder %s781_s3, %s557_s28  ;;  %s27_s25 = int_to_ptr.vmem [resolvable:$true] %s26_s25 }
   0x4   :  { %p561_p1 = scmp.lt.u32.totalorder %s557_s28, %s781_s3 }
   0x6   :  { %p563_p2 = pnand %p561_p1, %p558_p0 }
   0x8   :  { %566 = shalt.err (!%p563_p2)
}
   0x9   :  { %s567_s10 = scalar_lea.vmem %s27_s25, 1024  ;;  %p572_p4 = scmp.lt.s32.totalorder %s27_s25, %s27_s25 }
   0xa   :  { %p568_p3 = scmp.ne.s32.totalorder %s27_s25, %s567_s10  ;;  %p573_p5 = scmp.lt.s32.totalorder %s567_s10, %s567_s10 }
   0xc   :  { %p574_p6 = por %p573_p5, %p572_p4 }
   0xe   :  { %p575_p7 = pnand %p574_p6, %p568_p3 }
  0x10   :  { %578 = shalt.err (!%p575_p7)
}
  0x11   :  { %s630_s11 = smov 64   ;;  %s631_s12 = smov 4  }
  0x12   :  { %32 = dma.hbm_to_vmem [thread:$0]  %s781_s3, 1024, %s27_s25, [#allocation3], %s630_s11, %s630_s11, %s631_s12  }
  0x13   :  { %s632_s15 = smov [#allocation5]   ;;  %s579_s19 = scalar_lea.hbm %s783_s5, 1024 }
  0x14   :  { %s40_s16 = sshll.u32 %s632_s15, 4  ;;  %p580_p8 = scmp.ne.s32.totalorder %s783_s5, %s579_s19  ;;  %s41_s16 = int_to_ptr.vmem [resolvable:$true] %s40_s16 }
  0x15   :  { %p583_p9 = scmp.lt.u32.totalorder %s579_s19, %s783_s5 }
  0x17   :  { %p585_p10 = pnand %p583_p9, %p580_p8 }
  0x19   :  { %588 = shalt.err (!%p585_p10)
}
  0x1a   :  { %s589_s24 = scalar_lea.vmem %s41_s16, 1024  ;;  %p594_p12 = scmp.lt.s32.totalorder %s41_s16, %s41_s16 }
  0x1b   :  { %p590_p11 = scmp.ne.s32.totalorder %s41_s16, %s589_s24  ;;  %p595_p13 = scmp.lt.s32.totalorder %s589_s24, %s589_s24 }
  0x1d   :  { %p596_p0 = por %p595_p13, %p594_p12 }
  0x1f   :  { %p597_p1 = pnand %p596_p0, %p590_p11 }
  0x21   :  { %600 = shalt.err (!%p597_p1)
}
  0x22   :  { %46 = dma.hbm_to_vmem [thread:$0]  %s783_s5, 1024, %s41_s16, [#allocation6], %s630_s11, %s630_s11, %s631_s12  }
  0x23   :  { %623 = dma.done.wait [#allocation3], 1024  }
  0x24   :  { %624 = vsyncadd [#allocation3], 4294966272 }
  0x25   :  { %625 = dma.done.wait [#allocation6], 1024  }
  0x26   :  { %626 = vsyncadd [#allocation6], 4294966272  ;;  %v633_v0 = vmov 0.0   ;;  %vm634_vm0 = vmmov 0   ;;  %v533_v1 = vld [vmem:[%s779_s1] sm:$0xff]   ;;  %v534_v2 = vld [vmem:[%s779_s1 + $0x8] sm:$0xff]  }
  0x27   :  { %466 = vmatprep.subr.bf16.mxu0 %v633_v0  ;;  %482 = vmatprep.mubr.msk.bf16.mxu0 %vm634_vm0, %v633_v0  ;;  %v535_v3 = vld [vmem:[%s779_s1 + $0x10] sm:$0xff]   ;;  %v541_v4 = vld [vmem:[#allocation2] sm:$0xff]   ;;  %v536_v5 = vld [vmem:[%s779_s1 + $0x18] sm:$0xff]   ;;  %s635_s23 = smov [#allocation7]  }
  0x28   :  { %486 = vmatprep.subr.bf16.mxu1 %v633_v0  ;;  %502 = vmatprep.mubr.msk.bf16.mxu1 %vm634_vm0, %v633_v0  ;;  %v542_v6 = vld [vmem:[#allocation2 + $0x8] sm:$0xff]   ;;  %v537_v7 = vld [vmem:[%s779_s1 + $0x20] sm:$0xff]   ;;  %v543_v8 = vld [vmem:[#allocation2 + $0x10] sm:$0xff]   ;;  %s402_s24 = sshll.u32 %s635_s23, 4  ;;  %s403_s24 = int_to_ptr.vmem [resolvable:$true] %s402_s24 }
  0x29   :  { %467 = vmatpush3.bf16.msra.mxu0 %v533_v1  ;;  %487 = vmatpush3.bf16.msra.mxu1 %v541_v4  ;;  %v538_v9 = vld [vmem:[%s779_s1 + $0x28] sm:$0xff]   ;;  %v544_v10 = vld [vmem:[#allocation2 + $0x18] sm:$0xff]   ;;  %v539_v11 = vld [vmem:[%s779_s1 + $0x30] sm:$0xff]   ;;  %p606_p3 = scmp.lt.s32.totalorder %s403_s24, %s403_s24 }
  0x2a   :  { %468 = vmatprep.subr.bf16.mxu0 %v633_v0  ;;  %488 = vmatprep.subr.bf16.mxu1 %v633_v0  ;;  %v545_v12 = vld [vmem:[#allocation2 + $0x20] sm:$0xff]   ;;  %v540_v13 = vld [vmem:[%s779_s1 + $0x38] sm:$0xff]   ;;  %v546_v15 = vld [vmem:[#allocation2 + $0x28] sm:$0xff]  }
  0x2b   :  { %v56_v14 = vld [vmem:[%s778_s0] sm:$0x3]  ;;  %v547_v17 = vld [vmem:[#allocation2 + $0x30] sm:$0xff]   ;;  %v548_v18 = vld [vmem:[#allocation2 + $0x38] sm:$0xff]  }
  0x2c   :  { %v57_v16 = vpack.c.bf16 %v56_v14, %v56_v14  ;;  %v549_v19 = vld [vmem:[#allocation5] sm:$0xff]   ;;  %v550_v20 = vld [vmem:[#allocation5 + $0x8] sm:$0xff]   ;;  %v551_v21 = vld [vmem:[#allocation5 + $0x10] sm:$0xff]  }
  0x2d   :  { %469 = vmatpush3.bf16.msra.mxu0 %v534_v2  ;;  %489 = vmatpush3.bf16.msra.mxu1 %v542_v6  ;;  %v552_v22 = vld [vmem:[#allocation5 + $0x18] sm:$0xff]   ;;  %v553_v23 = vld [vmem:[#allocation5 + $0x20] sm:$0xff]   ;;  %v554_v24 = vld [vmem:[#allocation5 + $0x28] sm:$0xff]  }
  0x2e   :  { %470 = vmatprep.subr.bf16.mxu0 %v633_v0  ;;  %490 = vmatprep.subr.bf16.mxu1 %v633_v0  ;;  %v412_v25 = vld [vmem:[%s780_s2] ss:$0 sm:$0xff]  ;;  %v555_v33 = vld [vmem:[#allocation5 + $0x30] sm:$0xff]   ;;  %v556_v34 = vld [vmem:[#allocation5 + $0x38] sm:$0xff]  }
  0x2f   :  { %v421_v35 = vld [vmem:[%s782_s4] ss:$0 sm:$0xff]  ;;  %s601_s4 = scalar_lea.vmem %s403_s24, 32 }
  0x30   :  { %v430_v43 = vld [vmem:[%s784_s6] ss:$0 sm:$0xff]  ;;  %p602_p2 = scmp.ne.s32.totalorder %s403_s24, %s601_s4  ;;  %p607_p4 = scmp.lt.s32.totalorder %s601_s4, %s601_s4 }
  0x31   :  { %471 = vmatpush3.bf16.msra.mxu0 %v535_v3  ;;  %491 = vmatpush3.bf16.msra.mxu1 %v543_v8 }
  0x32   :  { %472 = vmatprep.subr.bf16.mxu0 %v633_v0  ;;  %492 = vmatprep.subr.bf16.mxu1 %v633_v0  ;;  %p608_p5 = por %p607_p4, %p606_p3 }
  0x34   :  { %p609_p6 = pnand %p608_p5, %p602_p2 }
  0x35   :  { %473 = vmatpush3.bf16.msra.mxu0 %v536_v5  ;;  %493 = vmatpush3.bf16.msra.mxu1 %v544_v10 }
  0x36   :  { %474 = vmatprep.subr.bf16.mxu0 %v633_v0  ;;  %494 = vmatprep.subr.bf16.mxu1 %v633_v0 }
  0x39   :  { %475 = vmatpush3.bf16.msra.mxu0 %v537_v7  ;;  %495 = vmatpush3.bf16.msra.mxu1 %v545_v12 }
  0x3a   :  { %476 = vmatprep.subr.bf16.mxu0 %v633_v0  ;;  %496 = vmatprep.subr.bf16.mxu1 %v633_v0 }
  0x3d   :  { %477 = vmatpush3.bf16.msra.mxu0 %v538_v9  ;;  %497 = vmatpush3.bf16.msra.mxu1 %v546_v15 }
  0x3e   :  { %478 = vmatprep.subr.bf16.mxu0 %v633_v0  ;;  %498 = vmatprep.subr.bf16.mxu1 %v633_v0 }
  0x41   :  { %479 = vmatpush3.bf16.msra.mxu0 %v539_v11  ;;  %499 = vmatpush3.bf16.msra.mxu1 %v547_v17 }
  0x42   :  { %480 = vmatprep.subr.bf16.mxu0 %v633_v0  ;;  %500 = vmatprep.subr.bf16.mxu1 %v633_v0 }
  0x45   :  { %481 = vmatpush3.bf16.msra.mxu0 %v540_v13  ;;  %501 = vmatpush3.bf16.msra.mxu1 %v548_v18 }
  0x46   :  { %506 = vmatprep.subr.bf16.mxu0 %v633_v0 }
  0x48   :  { %483 = vmatmul.mubr.bf16.vlgmr.msra.gmra.mrb[0].mxu0 %v57_v16 }
  0x49   :  { %522 = vmatprep.mubr.msk.bf16.mxu0 %vm634_vm0, %v633_v0  ;;  %507 = vmatpush3.bf16.msra.mxu0 %v549_v19 }
  0x4a   :  { %508 = vmatprep.subr.bf16.mxu0 %v633_v0 }
  0x4d   :  { %509 = vmatpush3.bf16.msra.mxu0 %v550_v20 }
  0x4e   :  { %510 = vmatprep.subr.bf16.mxu0 %v633_v0 }
  0x51   :  { %511 = vmatpush3.bf16.msra.mxu0 %v551_v21 }
  0x52   :  { %512 = vmatprep.subr.bf16.mxu0 %v633_v0 }
  0x55   :  { %513 = vmatpush3.bf16.msra.mxu0 %v552_v22 }
  0x56   :  { %514 = vmatprep.subr.bf16.mxu0 %v633_v0 }
  0x59   :  { %515 = vmatpush3.bf16.msra.mxu0 %v553_v23 }
  0x5a   :  { %516 = vmatprep.subr.bf16.mxu0 %v633_v0 }
  0x5d   :  { %517 = vmatpush3.bf16.msra.mxu0 %v554_v24 }
  0x5e   :  { %518 = vmatprep.subr.bf16.mxu0 %v633_v0 }
  0x61   :  { %519 = vmatpush3.bf16.msra.mxu0 %v555_v33 }
  0x62   :  { %520 = vmatprep.subr.bf16.mxu0 %v633_v0 }
  0x65   :  { %521 = vmatpush3.bf16.msra.mxu0 %v556_v34 }
 0x11b   :  { %v163_v26 = vpop.f32.mrb[0].mxu0 }
 0x11c   :  { %v164_v27 = vadd.f32 %v412_v25, %v163_v26  ;;  %v484_v28 = vpop.f32.mrb[1].mxu0 }
 0x11d   :  { %v166_v29 = vpop.f32.mrb[2].mxu0 }
 0x11e   :  { %v169_v30 = vmax.f32 %v164_v27, 0.0  ;;  %v485_v31 = vpop.f32.mrb[3].mxu0 }
 0x120   :  { %v170_v32 = vpack.c.bf16 %v169_v30, %v169_v30 }
 0x122   :  { %503 = vmatmul.mubr.bf16.vlgmr.msra.gmra.mrb[0].mxu1 %v170_v32 }
 0x1f5   :  { %v276_v36 = vpop.f32.mrb[0].mxu1 }
 0x1f6   :  { %v277_v37 = vadd.f32 %v421_v35, %v276_v36  ;;  %v504_v38 = vpop.f32.mrb[1].mxu1 }
 0x1f7   :  { %v279_v39 = vpop.f32.mrb[2].mxu1 }
 0x1f8   :  { %v282_v40 = vmax.f32 %v277_v37, 0.0  ;;  %v505_v41 = vpop.f32.mrb[3].mxu1 }
 0x1fa   :  { %v283_v42 = vpack.c.bf16 %v282_v40, %v282_v40 }
 0x1fc   :  { %523 = vmatmul.mubr.bf16.vlgmr.msra.gmra.mrb[4].mxu0 %v283_v42 }
 0x2cf   :  { %v389_v44 = vpop.f32.mrb[4].mxu0 }
 0x2d0   :  { %v390_v45 = vadd.f32 %v430_v43, %v389_v44  ;;  %v524_v46 = vpop.f32.mrb[5].mxu0 }
 0x2d1   :  { %v392_v47 = vpop.f32.mrb[6].mxu0 }
 0x2d2   :  { %395 = vst [vmem:[#allocation7] sm:$0x3] %v390_v45  ;;  %v525_v48 = vpop.f32.mrb[7].mxu0 }
 0x2d3   :  { %612 = shalt.err (!%p609_p6)
}
 0x2d4   :  { %s613_s6 = scalar_lea.hbm %s785_s7, 32 }
 0x2d5   :  { %p614_p7 = scmp.ne.s32.totalorder %s785_s7, %s613_s6  ;;  %p617_p8 = scmp.lt.u32.totalorder %s613_s6, %s785_s7 }
 0x2d7   :  { %p619_p9 = pnand %p617_p8, %p614_p7 }
 0x2d9   :  { %622 = shalt.err (!%p619_p9)
}
 0x2da   :  { %405 = dma.vmem_to_hbm [thread:$0]  %s403_s24, 32, %s785_s7, [#allocation4]  }
 0x2db   :  { %627 = dma.done.wait [#allocation4], 32  }
 0x2dc   :  { %628 = vsyncadd [#allocation4], 4294967264 }
 0x2dd   :  { %409 = vsyncpa [#allocation3], 1 }
 0x2de   :  { %410 = vsyncpa [#allocation6], 1 }
 0x2df   :  { %411 = vsyncpa [#allocation4], 1 }

// kernel: autoencoder_forward.1
= control target key start
LH: loop header
LB: loop body
LE: loop exit
PB: predicated region body
PF: predicated region fallthrough
CT: control target
= control target key end

     0   :  { %12 = vsyncpa [#allocation3], 0  ;;  %s778_s0 = inlined_call_operand.vmem [shape: f32[2,128], index: 0, kind: input, shape index: {}]   ;;  %s779_s1 = inlined_call_operand.vmem [shape: bf16[128,128], index: 1, kind: input, shape index: {}]   ;;  %s780_s2 = inlined_call_operand.vmem [shape: f32[1,128], index: 2, kind: input, shape index: {}]   ;;  %s781_s3 = inlined_call_operand.hbm [shape: bf16[128,128], index: 3, kind: input, shape index: {}]   ;;  %s782_s4 = inlined_call_operand.vmem [shape: f32[1,128], index: 4, kind: input, shape index: {}]   ;;  %s783_s5 = inlined_call_operand.hbm [shape: bf16[128,128], index: 5, kind: input, shape index: {}]   ;;  %s784_s6 = inlined_call_operand.vmem [shape: f32[1,128], index: 6, kind: input, shape index: {}]   ;;  %s785_s7 = inlined_call_operand.hbm [shape: f32[2,128], index: 7, kind: output, shape index: {}]  }
   0x1   :  { %13 = vsyncpa [#allocation6], 0 }
   0x2   :  { %14 = vsyncpa [#allocation4], 0  ;;  %s629_s24 = smov [#allocation2]   ;;  %s557_s28 = scalar_lea.hbm %s781_s3, 1024 }
   0x3   :  { %s26_s25 = sshll.u32 %s629_s24, 4  ;;  %p558_p0 = scmp.ne.s32.totalorder %s781_s3, %s557_s28  ;;  %s27_s25 = int_to_ptr.vmem [resolvable:$true] %s26_s25 }
   0x4   :  { %p561_p1 = scmp.lt.u32.totalorder %s557_s28, %s781_s3 }
   0x6   :  { %p563_p2 = pnand %p561_p1, %p558_p0 }
   0x8   :  { %566 = shalt.err (!%p563_p2)
}
   0x9   :  { %s567_s10 = scalar_lea.vmem %s27_s25, 1024  ;;  %p572_p4 = scmp.lt.s32.totalorder %s27_s25, %s27_s25 }
   0xa   :  { %p568_p3 = scmp.ne.s32.totalorder %s27_s25, %s567_s10  ;;  %p573_p5 = scmp.lt.s32.totalorder %s567_s10, %s567_s10 }
   0xc   :  { %p574_p6 = por %p573_p5, %p572_p4 }
   0xe   :  { %p575_p7 = pnand %p574_p6, %p568_p3 }
  0x10   :  { %578 = shalt.err (!%p575_p7)
}
  0x11   :  { %s630_s11 = smov 64   ;;  %s631_s12 = smov 4  }
  0x12   :  { %32 = dma.hbm_to_vmem [thread:$0]  %s781_s3, 1024, %s27_s25, [#allocation3], %s630_s11, %s630_s11, %s631_s12  }
  0x13   :  { %s632_s15 = smov [#allocation5]   ;;  %s579_s19 = scalar_lea.hbm %s783_s5, 1024 }
  0x14   :  { %s40_s16 = sshll.u32 %s632_s15, 4  ;;  %p580_p8 = scmp.ne.s32.totalorder %s783_s5, %s579_s19  ;;  %s41_s16 = int_to_ptr.vmem [resolvable:$true] %s40_s16 }
  0x15   :  { %p583_p9 = scmp.lt.u32.totalorder %s579_s19, %s783_s5 }
  0x17   :  { %p585_p10 = pnand %p583_p9, %p580_p8 }
  0x19   :  { %588 = shalt.err (!%p585_p10)
}
  0x1a   :  { %s589_s24 = scalar_lea.vmem %s41_s16, 1024  ;;  %p594_p12 = scmp.lt.s32.totalorder %s41_s16, %s41_s16 }
  0x1b   :  { %p590_p11 = scmp.ne.s32.totalorder %s41_s16, %s589_s24  ;;  %p595_p13 = scmp.lt.s32.totalorder %s589_s24, %s589_s24 }
  0x1d   :  { %p596_p0 = por %p595_p13, %p594_p12 }
  0x1f   :  { %p597_p1 = pnand %p596_p0, %p590_p11 }
  0x21   :  { %600 = shalt.err (!%p597_p1)
}
  0x22   :  { %46 = dma.hbm_to_vmem [thread:$0]  %s783_s5, 1024, %s41_s16, [#allocation6], %s630_s11, %s630_s11, %s631_s12  }
  0x23   :  { %623 = dma.done.wait [#allocation3], 1024  }
  0x24   :  { %624 = vsyncadd [#allocation3], 4294966272 }
  0x25   :  { %625 = dma.done.wait [#allocation6], 1024  }
  0x26   :  { %626 = vsyncadd [#allocation6], 4294966272  ;;  %v633_v0 = vmov 0.0   ;;  %vm634_vm0 = vmmov 0   ;;  %v533_v1 = vld [vmem:[%s779_s1] sm:$0xff]   ;;  %v534_v2 = vld [vmem:[%s779_s1 + $0x8] sm:$0xff]  }
  0x27   :  { %466 = vmatprep.subr.bf16.mxu0 %v633_v0  ;;  %482 = vmatprep.mubr.msk.bf16.mxu0 %vm634_vm0, %v633_v0  ;;  %v535_v3 = vld [vmem:[%s779_s1 + $0x10] sm:$0xff]   ;;  %v541_v4 = vld [vmem:[#allocation2] sm:$0xff]   ;;  %v536_v5 = vld [vmem:[%s779_s1 + $0x18] sm:$0xff]   ;;  %s635_s23 = smov [#allocation7]  }
  0x28   :  { %486 = vmatprep.subr.bf16.mxu1 %v633_v0  ;;  %502 = vmatprep.mubr.msk.bf16.mxu1 %vm634_vm0, %v633_v0  ;;  %v542_v6 = vld [vmem:[#allocation2 + $0x8] sm:$0xff]   ;;  %v537_v7 = vld [vmem:[%s779_s1 + $0x20] sm:$0xff]   ;;  %v543_v8 = vld [vmem:[#allocation2 + $0x10] sm:$0xff]   ;;  %s402_s24 = sshll.u32 %s635_s23, 4  ;;  %s403_s24 = int_to_ptr.vmem [resolvable:$true] %s402_s24 }
  0x29   :  { %467 = vmatpush3.bf16.msra.mxu0 %v533_v1  ;;  %487 = vmatpush3.bf16.msra.mxu1 %v541_v4  ;;  %v538_v9 = vld [vmem:[%s779_s1 + $0x28] sm:$0xff]   ;;  %v544_v10 = vld [vmem:[#allocation2 + $0x18] sm:$0xff]   ;;  %v539_v11 = vld [vmem:[%s779_s1 + $0x30] sm:$0xff]   ;;  %p606_p3 = scmp.lt.s32.totalorder %s403_s24, %s403_s24 }
  0x2a   :  { %468 = vmatprep.subr.bf16.mxu0 %v633_v0  ;;  %488 = vmatprep.subr.bf16.mxu1 %v633_v0  ;;  %v545_v12 = vld [vmem:[#allocation2 + $0x20] sm:$0xff]   ;;  %v540_v13 = vld [vmem:[%s779_s1 + $0x38] sm:$0xff]   ;;  %v546_v15 = vld [vmem:[#allocation2 + $0x28] sm:$0xff]  }
  0x2b   :  { %v56_v14 = vld [vmem:[%s778_s0] sm:$0x3]  ;;  %v547_v17 = vld [vmem:[#allocation2 + $0x30] sm:$0xff]   ;;  %v548_v18 = vld [vmem:[#allocation2 + $0x38] sm:$0xff]  }
  0x2c   :  { %v57_v16 = vpack.c.bf16 %v56_v14, %v56_v14  ;;  %v549_v19 = vld [vmem:[#allocation5] sm:$0xff]   ;;  %v550_v20 = vld [vmem:[#allocation5 + $0x8] sm:$0xff]   ;;  %v551_v21 = vld [vmem:[#allocation5 + $0x10] sm:$0xff]  }
  0x2d   :  { %469 = vmatpush3.bf16.msra.mxu0 %v534_v2  ;;  %489 = vmatpush3.bf16.msra.mxu1 %v542_v6  ;;  %v552_v22 = vld [vmem:[#allocation5 + $0x18] sm:$0xff]   ;;  %v553_v23 = vld [vmem:[#allocation5 + $0x20] sm:$0xff]   ;;  %v554_v24 = vld [vmem:[#allocation5 + $0x28] sm:$0xff]  }
  0x2e   :  { %470 = vmatprep.subr.bf16.mxu0 %v633_v0  ;;  %490 = vmatprep.subr.bf16.mxu1 %v633_v0  ;;  %v412_v25 = vld [vmem:[%s780_s2] ss:$0 sm:$0xff]  ;;  %v555_v33 = vld [vmem:[#allocation5 + $0x30] sm:$0xff]   ;;  %v556_v34 = vld [vmem:[#allocation5 + $0x38] sm:$0xff]  }
  0x2f   :  { %v421_v35 = vld [vmem:[%s782_s4] ss:$0 sm:$0xff]  ;;  %s601_s4 = scalar_lea.vmem %s403_s24, 32 }
  0x30   :  { %v430_v43 = vld [vmem:[%s784_s6] ss:$0 sm:$0xff]  ;;  %p602_p2 = scmp.ne.s32.totalorder %s403_s24, %s601_s4  ;;  %p607_p4 = scmp.lt.s32.totalorder %s601_s4, %s601_s4 }
  0x31   :  { %471 = vmatpush3.bf16.msra.mxu0 %v535_v3  ;;  %491 = vmatpush3.bf16.msra.mxu1 %v543_v8 }
  0x32   :  { %472 = vmatprep.subr.bf16.mxu0 %v633_v0  ;;  %492 = vmatprep.subr.bf16.mxu1 %v633_v0  ;;  %p608_p5 = por %p607_p4, %p606_p3 }
  0x34   :  { %p609_p6 = pnand %p608_p5, %p602_p2 }
  0x35   :  { %473 = vmatpush3.bf16.msra.mxu0 %v536_v5  ;;  %493 = vmatpush3.bf16.msra.mxu1 %v544_v10 }
  0x36   :  { %474 = vmatprep.subr.bf16.mxu0 %v633_v0  ;;  %494 = vmatprep.subr.bf16.mxu1 %v633_v0 }
  0x39   :  { %475 = vmatpush3.bf16.msra.mxu0 %v537_v7  ;;  %495 = vmatpush3.bf16.msra.mxu1 %v545_v12 }
  0x3a   :  { %476 = vmatprep.subr.bf16.mxu0 %v633_v0  ;;  %496 = vmatprep.subr.bf16.mxu1 %v633_v0 }
  0x3d   :  { %477 = vmatpush3.bf16.msra.mxu0 %v538_v9  ;;  %497 = vmatpush3.bf16.msra.mxu1 %v546_v15 }
  0x3e   :  { %478 = vmatprep.subr.bf16.mxu0 %v633_v0  ;;  %498 = vmatprep.subr.bf16.mxu1 %v633_v0 }
  0x41   :  { %479 = vmatpush3.bf16.msra.mxu0 %v539_v11  ;;  %499 = vmatpush3.bf16.msra.mxu1 %v547_v17 }
  0x42   :  { %480 = vmatprep.subr.bf16.mxu0 %v633_v0  ;;  %500 = vmatprep.subr.bf16.mxu1 %v633_v0 }
  0x45   :  { %481 = vmatpush3.bf16.msra.mxu0 %v540_v13  ;;  %501 = vmatpush3.bf16.msra.mxu1 %v548_v18 }
  0x46   :  { %506 = vmatprep.subr.bf16.mxu0 %v633_v0 }
  0x48   :  { %483 = vmatmul.mubr.bf16.vlgmr.msra.gmra.mrb[0].mxu0 %v57_v16 }
  0x49   :  { %522 = vmatprep.mubr.msk.bf16.mxu0 %vm634_vm0, %v633_v0  ;;  %507 = vmatpush3.bf16.msra.mxu0 %v549_v19 }
  0x4a   :  { %508 = vmatprep.subr.bf16.mxu0 %v633_v0 }
  0x4d   :  { %509 = vmatpush3.bf16.msra.mxu0 %v550_v20 }
  0x4e   :  { %510 = vmatprep.subr.bf16.mxu0 %v633_v0 }
  0x51   :  { %511 = vmatpush3.bf16.msra.mxu0 %v551_v21 }
  0x52   :  { %512 = vmatprep.subr.bf16.mxu0 %v633_v0 }
  0x55   :  { %513 = vmatpush3.bf16.msra.mxu0 %v552_v22 }
  0x56   :  { %514 = vmatprep.subr.bf16.mxu0 %v633_v0 }
  0x59   :  { %515 = vmatpush3.bf16.msra.mxu0 %v553_v23 }
  0x5a   :  { %516 = vmatprep.subr.bf16.mxu0 %v633_v0 }
  0x5d   :  { %517 = vmatpush3.bf16.msra.mxu0 %v554_v24 }
  0x5e   :  { %518 = vmatprep.subr.bf16.mxu0 %v633_v0 }
  0x61   :  { %519 = vmatpush3.bf16.msra.mxu0 %v555_v33 }
  0x62   :  { %520 = vmatprep.subr.bf16.mxu0 %v633_v0 }
  0x65   :  { %521 = vmatpush3.bf16.msra.mxu0 %v556_v34 }
 0x11b   :  { %v163_v26 = vpop.f32.mrb[0].mxu0 }
 0x11c   :  { %v164_v27 = vadd.f32 %v412_v25, %v163_v26  ;;  %v484_v28 = vpop.f32.mrb[1].mxu0 }
 0x11d   :  { %v166_v29 = vpop.f32.mrb[2].mxu0 }
 0x11e   :  { %v169_v30 = vmax.f32 %v164_v27, 0.0  ;;  %v485_v31 = vpop.f32.mrb[3].mxu0 }
 0x120   :  { %v170_v32 = vpack.c.bf16 %v169_v30, %v169_v30 }
 0x122   :  { %503 = vmatmul.mubr.bf16.vlgmr.msra.gmra.mrb[0].mxu1 %v170_v32 }
 0x1f5   :  { %v276_v36 = vpop.f32.mrb[0].mxu1 }
 0x1f6   :  { %v277_v37 = vadd.f32 %v421_v35, %v276_v36  ;;  %v504_v38 = vpop.f32.mrb[1].mxu1 }
 0x1f7   :  { %v279_v39 = vpop.f32.mrb[2].mxu1 }
 0x1f8   :  { %v282_v40 = vmax.f32 %v277_v37, 0.0  ;;  %v505_v41 = vpop.f32.mrb[3].mxu1 }
 0x1fa   :  { %v283_v42 = vpack.c.bf16 %v282_v40, %v282_v40 }
 0x1fc   :  { %523 = vmatmul.mubr.bf16.vlgmr.msra.gmra.mrb[4].mxu0 %v283_v42 }
 0x2cf   :  { %v389_v44 = vpop.f32.mrb[4].mxu0 }
 0x2d0   :  { %v390_v45 = vadd.f32 %v430_v43, %v389_v44  ;;  %v524_v46 = vpop.f32.mrb[5].mxu0 }
 0x2d1   :  { %v392_v47 = vpop.f32.mrb[6].mxu0 }
 0x2d2   :  { %395 = vst [vmem:[#allocation7] sm:$0x3] %v390_v45  ;;  %v525_v48 = vpop.f32.mrb[7].mxu0 }
 0x2d3   :  { %612 = shalt.err (!%p609_p6)
}
 0x2d4   :  { %s613_s6 = scalar_lea.hbm %s785_s7, 32 }
 0x2d5   :  { %p614_p7 = scmp.ne.s32.totalorder %s785_s7, %s613_s6  ;;  %p617_p8 = scmp.lt.u32.totalorder %s613_s6, %s785_s7 }
 0x2d7   :  { %p619_p9 = pnand %p617_p8, %p614_p7 }
 0x2d9   :  { %622 = shalt.err (!%p619_p9)
}
 0x2da   :  { %405 = dma.vmem_to_hbm [thread:$0]  %s403_s24, 32, %s785_s7, [#allocation4]  }
 0x2db   :  { %627 = dma.done.wait [#allocation4], 32  }
 0x2dc   :  { %628 = vsyncadd [#allocation4], 4294967264 }
 0x2dd   :  { %409 = vsyncpa [#allocation3], 1 }
 0x2de   :  { %410 = vsyncpa [#allocation6], 1 }
 0x2df   :  { %411 = vsyncpa [#allocation4], 1 }

</bundles_post_ra>
